<compile_context>
chip_gen: v7x
topology: tpu7x:2x2x1
jax: 0.10.0
libtpu: 0.0.40
codegen_flags: <defaults>
</compile_context>

<pallas_src>
from functools import partial

import jax
import jax.numpy as jnp
from jax.experimental import pallas as pl
from jax.experimental.pallas import tpu as pltpu

# ----------------------------------------------------------------------------
# Packed layout constants
# ----------------------------------------------------------------------------
X_LEN = 324          # real input length (6 x 54)
K_PAD = 384          # padded contraction width for layer 1 (rows >= 324 of wa are 0)
H1 = 256             # linear1 width
LANE = 128           # lane-dense width for layers 2..4
WB_ROWS = 512        # 256 (W2) + 128 (W3, cols>=64 zero) + 128 (W4 pad block)


# ----------------------------------------------------------------------------
# Shared forward math (used by the kernel and by the packed JAX reference).
#   x    : (TB, K_PAD) bf16   (lanes >= 324 are zero)
#   wa   : (K_PAD, H1) bf16   rows 0..323 = W_fold, rows >= 324 zero
#   wb   : (WB_ROWS, LANE) bf16
#            rows   0..255 = W2
#            rows 256..383 = W3  (cols >= 64 zero)
#            rows 384..511 = W4  (rows >= 448 zero, cols >= 13 zero)
#   bias : (4, H1) f32   row0 = b_fold(256), row1 = b2(128), row2 = b3(64),
#                        row3 = b4(13)  (unused lanes zero)
# returns (TB, LANE) f32 where lanes >= 13 are exactly zero.
# ----------------------------------------------------------------------------
def _forward_math(x, wa, wb, bias):
    b1 = bias[0:1, :]            # (1, 256)
    b2 = bias[1:2, 0:LANE]       # (1, 128)
    b3 = bias[2:3, 0:LANE]
    b4 = bias[3:4, 0:LANE]

    # Layer 1: folded 6-head block-diag + linear1, K padded to 384.
    h = jnp.dot(x, wa, preferred_element_type=jnp.float32) + b1          # (TB, 256)
    h = jnp.maximum(h, 0.0)

    # Layer 2: 256 -> 128, ReLU
    h = jnp.dot(h.astype(jnp.bfloat16), wb[0:256, :],
                preferred_element_type=jnp.float32) + b2                 # (TB, 128)
    h = jnp.maximum(h, 0.0)

    # Layer 3: 128 -> 64 (lane-padded to 128), ReLU
    h = jnp.dot(h.astype(jnp.bfloat16), wb[256:384, :],
                preferred_element_type=jnp.float32) + b3                 # (TB, 128)
    h = jnp.maximum(h, 0.0)

    # Layer 4: 64 -> 13 (lane-padded to 128), no activation
    h = jnp.dot(h.astype(jnp.bfloat16), wb[384:512, :],
                preferred_element_type=jnp.float32) + b4                 # (TB, 128)
    return h


def mynet_kernel(x_ref, wa_ref, wb_ref, bias_ref, out_ref, xpad_ref):
    # Fused input prep: cast to bf16 and place into a zeroed, lane-padded
    # VMEM scratch slab so the layer-1 contraction runs at aligned K=384.
    xpad_ref[...] = jnp.zeros_like(xpad_ref)                 # (TB, 384) bf16
    xpad_ref[:, :X_LEN] = x_ref[...].astype(jnp.bfloat16)    # masked store, lanes 0..323
    out_ref[...] = _forward_math(xpad_ref[...], wa_ref[...], wb_ref[...],
                                 bias_ref[...])


# ----------------------------------------------------------------------------
# Parameter construction (mimics initialize(): xavier-normal weights, N(0,1)
# biases).  Raw params stay f32 for the exact reference; packed params are the
# folded / padded buffers consumed by the kernel (weights bf16, biases f32).
# ----------------------------------------------------------------------------
def _xavier_normal(key, fan_in, fan_out):
    std = (2.0 / (fan_in + fan_out)) ** 0.5
    return std * jax.random.normal(key, (fan_in, fan_out), dtype=jnp.float32)


def make_raw_params(key):
    keys = jax.random.split(key, 20)
    it = iter(keys)
    head_ws = [_xavier_normal(next(it), 54, 9) for _ in range(6)]
    head_bs = [jax.random.normal(next(it), (9,), dtype=jnp.float32)
               for _ in range(6)]
    w1 = _xavier_normal(next(it), 54, 256)
    b1 = jax.random.normal(next(it), (256,), dtype=jnp.float32)
    w2 = _xavier_normal(next(it), 256, 128)
    b2 = jax.random.normal(next(it), (128,), dtype=jnp.float32)
    w3 = _xavier_normal(next(it), 128, 64)
    b3 = jax.random.normal(next(it), (64,), dtype=jnp.float32)
    w4 = _xavier_normal(next(it), 64, 13)
    b4 = jax.random.normal(next(it), (13,), dtype=jnp.float32)
    return dict(head_ws=head_ws, head_bs=head_bs,
                w1=w1, b1=b1, w2=w2, b2=b2, w3=w3, b3=b3, w4=w4, b4=b4)


def pack_params(raw):
    # Block-diagonal heads: (324, 54) weight, (54,) bias.
    w_heads = jnp.zeros((X_LEN, 54), jnp.float32)
    for i, hw in enumerate(raw["head_ws"]):
        w_heads = w_heads.at[i * 54:(i + 1) * 54, i * 9:(i + 1) * 9].set(hw)
    b_heads = jnp.concatenate(raw["head_bs"])

    # Fold heads into linear1 (no activation between them => exact algebra).
    w_fold = w_heads @ raw["w1"]                     # (324, 256)
    b_fold = b_heads @ raw["w1"] + raw["b1"]         # (256,)

    wa = jnp.zeros((K_PAD, H1), jnp.float32).at[:X_LEN, :].set(w_fold)

    wb = jnp.zeros((WB_ROWS, LANE), jnp.float32)
    wb = wb.at[0:256, 0:128].set(raw["w2"])
    wb = wb.at[256:384, 0:64].set(raw["w3"])
    wb = wb.at[384:448, 0:13].set(raw["w4"])

    bias = jnp.zeros((4, H1), jnp.float32)
    bias = bias.at[0, :].set(b_fold)
    bias = bias.at[1, 0:128].set(raw["b2"])
    bias = bias.at[2, 0:64].set(raw["b3"])
    bias = bias.at[3, 0:13].set(raw["b4"])

    return wa.astype(jnp.bfloat16), wb.astype(jnp.bfloat16), bias


# ----------------------------------------------------------------------------
# Wrapper: batched forward.
#   x : f32[B, 324]  ->  f32[B, 128] lane-dense block; columns [:13] are the
#   module outputs, columns 13..127 are exactly zero (consumer slices).
#   For single-sample use, pass x with B == 1.
# ----------------------------------------------------------------------------
@partial(jax.jit, static_argnames=("block_b",))
def mynet_forward(x, wa, wb, bias, block_b=128):
    B = x.shape[0]
    tb = min(block_b, B)
    assert B % tb == 0, "batch must be a multiple of the block size"
    grid = (B // tb,)

    cost = pl.CostEstimate(
        flops=2 * B * (K_PAD * H1 + H1 * LANE + LANE * LANE + LANE * LANE),
        transcendentals=0,
        bytes_accessed=(B * X_LEN * 4 + K_PAD * H1 * 2 + WB_ROWS * LANE * 2
                        + 4 * H1 * 4 + B * LANE * 4),
    )

    return pl.pallas_call(
        mynet_kernel,
        out_shape=jax.ShapeDtypeStruct((B, LANE), jnp.float32),
        grid=grid,
        in_specs=[
            pl.BlockSpec((tb, X_LEN), lambda i: (i, 0)),        # per-step batch tile
            pl.BlockSpec((K_PAD, H1), lambda i: (0, 0)),        # weights: VMEM-resident
            pl.BlockSpec((WB_ROWS, LANE), lambda i: (0, 0)),
            pl.BlockSpec((4, H1), lambda i: (0, 0)),            # f32 biases
        ],
        out_specs=pl.BlockSpec((tb, LANE), lambda i: (i, 0)),
        scratch_shapes=[pltpu.VMEM((tb, K_PAD), jnp.bfloat16)],
        compiler_params=pltpu.CompilerParams(
            dimension_semantics=("parallel",)),                 # megacore on v7x
        cost_estimate=cost,
    )(x, wa, wb, bias)


# ----------------------------------------------------------------------------
# References
# ----------------------------------------------------------------------------
def mynet_ref_f32(xb, raw):
    """Exact f32 PyTorch-equivalent math (unfused heads), applied per row."""
    def one(x):
        hs = [x[i * 54:(i + 1) * 54] @ raw["head_ws"][i] + raw["head_bs"][i]
              for i in range(6)]
        h = jnp.concatenate(hs)
        h = jnp.maximum(h @ raw["w1"] + raw["b1"], 0.0)
        h = jnp.maximum(h @ raw["w2"] + raw["b2"], 0.0)
        h = jnp.maximum(h @ raw["w3"] + raw["b3"], 0.0)
        return h @ raw["w4"] + raw["b4"]
    return jax.vmap(one)(xb.astype(jnp.float32))


def mynet_ref_packed(xb, wa, wb, bias):
    """Same packed bf16/f32 math as the kernel, in plain JAX."""
    xp = jnp.pad(xb.astype(jnp.bfloat16), ((0, 0), (0, K_PAD - X_LEN)))
    return _forward_math(xp, wa, wb, bias)


if __name__ == "__main__":
    key = jax.random.PRNGKey(0)
    pkey, xkey = jax.random.split(key)

    raw = make_raw_params(pkey)
    wa, wb, bias = pack_params(raw)

    B = 32
    x = jax.random.normal(xkey, (B, X_LEN), dtype=jnp.float32)

    # block_b=16 -> grid=(2,), exercising the batched pipeline + parallel axis.
    out = mynet_forward(x, wa, wb, bias, block_b=16)
    jax.block_until_ready(out)
    assert out.shape == (B, LANE) and out.dtype == jnp.float32

    # Lane-dense block: columns >= 13 are exactly zero by construction.
    assert bool(jnp.all(out[:, 13:] == 0.0))

    y = out[:, :13]  # consumer-side slice (module semantics)

    # Kernel vs identical packed-precision math in plain JAX (tight).
    y_packed = mynet_ref_packed(x, wa, wb, bias)[:, :13]
    assert jnp.allclose(y, y_packed, atol=1e-2, rtol=1e-2), (
        float(jnp.max(jnp.abs(y - y_packed))))

    # Kernel vs full-precision f32 module semantics (loose: bf16 weights /
    # activations and the exact head->linear1 fold reassociate sums).
    y_f32 = mynet_ref_f32(x, raw)
    assert jnp.allclose(y, y_f32, atol=1e-1, rtol=1e-1), (
        float(jnp.max(jnp.abs(y - y_f32))))

    print("KERNEL_OK")
</pallas_src>

<mosaic_0001>
module attributes {stable_mosaic.version = 11 : i64} {
  func.func @mynet_kernel(%arg0: i32, %arg1: memref<16x324xf32, #tpu.memory_space<vmem>>, %arg2: memref<384x256xbf16, #tpu.memory_space<vmem>>, %arg3: memref<512x128xbf16, #tpu.memory_space<vmem>>, %arg4: memref<4x256xf32, #tpu.memory_space<vmem>>, %arg5: memref<16x128xf32, #tpu.memory_space<vmem>>, %arg6: memref<16x384xbf16, #tpu.memory_space<vmem>>) attributes {dimension_semantics = [#tpu.dimension_semantics<parallel>], iteration_bounds = array<i64: 2>, scalar_prefetch = 0 : i64, scratch_operands = 1 : i64, tpu.core_type = #tpu.core_type<tc>, window_params = [{transform_indices = @transform_0, window_bounds = array<i64: 16, 324>}, {pipeline_mode = #tpu.pipeline_mode<synchronous>, transform_indices = @transform_1, window_bounds = array<i64: 384, 256>}, {pipeline_mode = #tpu.pipeline_mode<synchronous>, transform_indices = @transform_2, window_bounds = array<i64: 512, 128>}, {pipeline_mode = #tpu.pipeline_mode<synchronous>, transform_indices = @transform_3, window_bounds = array<i64: 4, 256>}, {transform_indices = @transform_4, window_bounds = array<i64: 16, 128>}]} {
    %cst = arith.constant 0.000000e+00 : bf16
    %0 = vector.broadcast %cst : bf16 to vector<16x384xbf16>
    %c0 = arith.constant 0 : index
    %c0_0 = arith.constant 0 : index
    %1 = vector.load %arg6[%c0, %c0_0] : memref<16x384xbf16, #tpu.memory_space<vmem>>, vector<16x384xbf16>
    tpu.vector_store %arg6[%c0, %c0_0], %0 {strides = array<i32>} : memref<16x384xbf16, #tpu.memory_space<vmem>>, vector<16x384xbf16>,
    %c0_1 = arith.constant 0 : index
    %c0_2 = arith.constant 0 : index
    %2 = vector.load %arg1[%c0_1, %c0_2] : memref<16x324xf32, #tpu.memory_space<vmem>>, vector<16x324xf32>
    %3 = arith.truncf %2 : vector<16x324xf32> to vector<16x324xbf16>
    %c0_3 = arith.constant 0 : index
    %c0_4 = arith.constant 0 : index
    %4 = vector.load %arg6[%c0_3, %c0_4] : memref<16x384xbf16, #tpu.memory_space<vmem>>, vector<16x324xbf16>
    tpu.vector_store %arg6[%c0_3, %c0_4], %3 {strides = array<i32>} : memref<16x384xbf16, #tpu.memory_space<vmem>>, vector<16x324xbf16>,
    %c0_5 = arith.constant 0 : index
    %c0_6 = arith.constant 0 : index
    %5 = vector.load %arg6[%c0_5, %c0_6] : memref<16x384xbf16, #tpu.memory_space<vmem>>, vector<16x384xbf16>
    %c0_7 = arith.constant 0 : index
    %c0_8 = arith.constant 0 : index
    %6 = vector.load %arg2[%c0_7, %c0_8] : memref<384x256xbf16, #tpu.memory_space<vmem>>, vector<384x256xbf16>
    %c0_9 = arith.constant 0 : index
    %c0_10 = arith.constant 0 : index
    %7 = vector.load %arg3[%c0_9, %c0_10] : memref<512x128xbf16, #tpu.memory_space<vmem>>, vector<512x128xbf16>
    %c0_11 = arith.constant 0 : index
    %c0_12 = arith.constant 0 : index
    %8 = vector.load %arg4[%c0_11, %c0_12] : memref<4x256xf32, #tpu.memory_space<vmem>>, vector<4x256xf32>
    %9 = vector.extract_strided_slice %8 {offsets = [0, 0], sizes = [1, 256], strides = [1, 1]} : vector<4x256xf32> to vector<1x256xf32>
    %10 = vector.extract_strided_slice %8 {offsets = [1, 0], sizes = [1, 128], strides = [1, 1]} : vector<4x256xf32> to vector<1x128xf32>
    %11 = vector.extract_strided_slice %8 {offsets = [2, 0], sizes = [1, 128], strides = [1, 1]} : vector<4x256xf32> to vector<1x128xf32>
    %12 = vector.extract_strided_slice %8 {offsets = [3, 0], sizes = [1, 128], strides = [1, 1]} : vector<4x256xf32> to vector<1x128xf32>
    %cst_13 = arith.constant dense<0.000000e+00> : vector<16x256xf32>
    %13 = tpu.matmul %5, %6, %cst_13 {dimension_numbers = #tpu.dot_dimension_numbers<[1], [0], [0], [1], [0, 0, 1, 1], [], []>} : vector<16x384xbf16>, vector<384x256xbf16>, vector<16x256xf32> -> vector<16x256xf32>
    %14 = vector.broadcast %9 : vector<1x256xf32> to vector<16x256xf32>
    %15 = arith.addf %13, %14 : vector<16x256xf32>
    %cst_14 = arith.constant 0.000000e+00 : f32
    %16 = vector.broadcast %cst_14 : f32 to vector<16x256xf32>
    %17 = arith.maximumf %15, %16 : vector<16x256xf32>
    %18 = arith.truncf %17 : vector<16x256xf32> to vector<16x256xbf16>
    %19 = vector.extract_strided_slice %7 {offsets = [0, 0], sizes = [256, 128], strides = [1, 1]} : vector<512x128xbf16> to vector<256x128xbf16>
    %cst_15 = arith.constant dense<0.000000e+00> : vector<16x128xf32>
    %20 = tpu.matmul %18, %19, %cst_15 {dimension_numbers = #tpu.dot_dimension_numbers<[1], [0], [0], [1], [0, 0, 1, 1], [], []>} : vector<16x256xbf16>, vector<256x128xbf16>, vector<16x128xf32> -> vector<16x128xf32>
    %21 = vector.broadcast %10 : vector<1x128xf32> to vector<16x128xf32>
    %22 = arith.addf %20, %21 : vector<16x128xf32>
    %cst_16 = arith.constant 0.000000e+00 : f32
    %23 = vector.broadcast %cst_16 : f32 to vector<16x128xf32>
    %24 = arith.maximumf %22, %23 : vector<16x128xf32>
    %25 = arith.truncf %24 : vector<16x128xf32> to vector<16x128xbf16>
    %26 = vector.extract_strided_slice %7 {offsets = [256, 0], sizes = [128, 128], strides = [1, 1]} : vector<512x128xbf16> to vector<128x128xbf16>
    %cst_17 = arith.constant dense<0.000000e+00> : vector<16x128xf32>
    %27 = tpu.matmul %25, %26, %cst_17 {dimension_numbers = #tpu.dot_dimension_numbers<[1], [0], [0], [1], [0, 0, 1, 1], [], []>} : vector<16x128xbf16>, vector<128x128xbf16>, vector<16x128xf32> -> vector<16x128xf32>
    %28 = vector.broadcast %11 : vector<1x128xf32> to vector<16x128xf32>
    %29 = arith.addf %27, %28 : vector<16x128xf32>
    %cst_18 = arith.constant 0.000000e+00 : f32
    %30 = vector.broadcast %cst_18 : f32 to vector<16x128xf32>
    %31 = arith.maximumf %29, %30 : vector<16x128xf32>
    %32 = arith.truncf %31 : vector<16x128xf32> to vector<16x128xbf16>
    %33 = vector.extract_strided_slice %7 {offsets = [384, 0], sizes = [128, 128], strides = [1, 1]} : vector<512x128xbf16> to vector<128x128xbf16>
    %cst_19 = arith.constant dense<0.000000e+00> : vector<16x128xf32>
    %34 = tpu.matmul %32, %33, %cst_19 {dimension_numbers = #tpu.dot_dimension_numbers<[1], [0], [0], [1], [0, 0, 1, 1], [], []>} : vector<16x128xbf16>, vector<128x128xbf16>, vector<16x128xf32> -> vector<16x128xf32>
    %35 = vector.broadcast %12 : vector<1x128xf32> to vector<16x128xf32>
    %36 = arith.addf %34, %35 : vector<16x128xf32>
    %c0_20 = arith.constant 0 : index
    %c0_21 = arith.constant 0 : index
    %37 = vector.load %arg5[%c0_20, %c0_21] : memref<16x128xf32, #tpu.memory_space<vmem>>, vector<16x128xf32>
    tpu.vector_store %arg5[%c0_20, %c0_21], %36 {strides = array<i32>} : memref<16x128xf32, #tpu.memory_space<vmem>>, vector<16x128xf32>,
    return
  }
  func.func @transform_0(%arg0: i32) -> (i32, i32) {
    %c0_i32 = arith.constant 0 : i32
    %c0_i32_0 = arith.constant 0 : i32
    return %arg0, %c0_i32 : i32, i32
  }
  func.func @transform_1(%arg0: i32) -> (i32, i32) {
    %c0_i32 = arith.constant 0 : i32
    %c0_i32_0 = arith.constant 0 : i32
    %c0_i32_1 = arith.constant 0 : i32
    return %c0_i32, %c0_i32_0 : i32, i32
  }
  func.func @transform_2(%arg0: i32) -> (i32, i32) {
    %c0_i32 = arith.constant 0 : i32
    %c0_i32_0 = arith.constant 0 : i32
    %c0_i32_1 = arith.constant 0 : i32
    return %c0_i32, %c0_i32_0 : i32, i32
  }
  func.func @transform_3(%arg0: i32) -> (i32, i32) {
    %c0_i32 = arith.constant 0 : i32
    %c0_i32_0 = arith.constant 0 : i32
    %c0_i32_1 = arith.constant 0 : i32
    return %c0_i32, %c0_i32_0 : i32, i32
  }
  func.func @transform_4(%arg0: i32) -> (i32, i32) {
    %c0_i32 = arith.constant 0 : i32
    %c0_i32_0 = arith.constant 0 : i32
    return %arg0, %c0_i32 : i32, i32
  }
}

</mosaic_0001>

<bundles_post_ra>
// kernel: mynet_forward.1
= control target key start
LH: loop header
LB: loop body
LE: loop exit
PB: predicated region body
PF: predicated region fallthrough
CT: control target
= control target key end

     0   :  { %9 = vsyncpa [#allocation4], 0  ;;  %s2033_s0 = inlined_call_operand.hbm [shape: f32[32,324], index: 0, kind: input, shape index: {}]   ;;  %s2034_s1 = inlined_call_operand.hbm [shape: bf16[384,256], index: 1, kind: input, shape index: {}]   ;;  %s2035_s2 = inlined_call_operand.hbm [shape: bf16[512,128], index: 2, kind: input, shape index: {}]   ;;  %s2036_s3 = inlined_call_operand.vmem [shape: f32[4,256], index: 3, kind: input, shape index: {}]   ;;  %s2037_s4 = inlined_call_operand.hbm [shape: f32[32,128], index: 4, kind: output, shape index: {}]  }
   0x1   :  { %11 = vsyncpa [#allocation4 + $0x1], 0 }
   0x2   :  { %12 = vsyncpa [#allocation7], 0 }
   0x3   :  { %13 = vsyncpa [#allocation5], 0 }
   0x4   :  { %15 = vsyncpa [#allocation5 + $0x1], 0  ;;  %s1742_s15 = smov 0   ;;  %s1744_s16 = smov 0  }
   0x5   :  { %s1746_s17 = smov 0   ;;  %s1748_s18 = smov 0  }
   0x6 LB: > { %s1763_s19 = sadd.s32 4294967295, %s1700_s18   ;;  %s1173_s20 = sadd.s32 4294967294, %s1700_s18   ;;  %s1700_s18 = sphi %s1748_s18, %s2057_s18   ;;  %s1696_s17 = sphi %s1746_s17, %s2056_s17   ;;  %s1692_s16 = sphi %s1744_s16, %s2055_s16   ;;  %s1688_s15 = sphi %s1742_s15, %s2054_s15  }
   0x7   : > { %p41_p0 = scmp.ne.s32.totalorder %s1692_s16, %s1688_s15  ;;  %p2038_p1 = scmp.eq.s32.totalorder %s1763_s19, 0 }
   0x8   : > { %p134_p3 = scmp.eq.s32.totalorder %s1173_s20, 1  ;;  %p1174_p5 = scmp.ge.s32.totalorder %s1700_s18, 1 }
   0x9   : > { %p1772_p4 = por %p2038_p1, %p41_p0  ;;  %p141_p7 = scmp.lt.s32.totalorder %s1700_s18, 3 }
   0xa   : > { %p1777_p6 = por %p134_p3, %p41_p0  ;;  %s1702_s24 = smov [#allocation6]  }
   0xb   : > { %s2041_s21 = scalar_select %p1772_p4, 1, 0 }
   0xc   : > { %s2042_s22 = scalar_select %p1777_p6, 1, 0 }
   0xd   : > { %p1782_p8 = pnand %p1174_p5, %p141_p7  ;;  %s153_s25 = sshll.u32 %s1702_s24, 4  ;;  %s1786_s25 = int_to_ptr.vmem [resolvable:$true] %s153_s25 }
   0xe   : > { %s1703_s27 = smov [#allocation8]   ;;  %s1544_s5 = scalar_lea.hbm %s2034_s1, 6144 }
   0xf   : > { %p1374_p9 = pneg %p1782_p8  ;;  %s166_s28 = sshll.u32 %s1703_s27, 4  ;;  %s1797_s28 = int_to_ptr.vmem [resolvable:$true] %s166_s28 }
  0x10   : > { %p1545_p12 = scmp.ne.s32.totalorder %s2034_s1, %s1544_s5  ;;  %p1551_p5 = scmp.lt.u32.totalorder %s1544_s5, %s2034_s1 }
  0x11   : > { %p1793_p11 = pnand %p1374_p9, %p2038_p1 }
  0x13   : > { %p1546_p13 = pneg %p1793_p11 }
  0x15   : > { %p1547_p0 = pnand %p1546_p13, %p1545_p12 }
  0x17   : > { %p1548_p3 = pneg %p1547_p0 }
  0x19   : > { %p1553_p7 = pnand %p1551_p5, %p1548_p3 }
  0x1b   : > { %1556 = shalt.err (!%p1553_p7)
}
  0x1c   : > { %s1557_s10 = scalar_lea.vmem %s1786_s25, 6144  ;;  %p1565_p2 = scmp.lt.s32.totalorder %s1786_s25, %s1786_s25 }
  0x1d   : > { %p1558_p9 = scmp.ne.s32.totalorder %s1786_s25, %s1557_s10  ;;  %p1566_p12 = scmp.lt.s32.totalorder %s1557_s10, %s1557_s10 }
  0x1f   : > { %p1560_p10 = pnand %p1558_p9, %p1546_p13  ;;  %p1567_p0 = por %p1566_p12, %p1565_p2 }
  0x21   : > { %p1561_p1 = pneg %p1560_p10 }
  0x23   : > { %p1568_p6 = pnand %p1567_p0, %p1561_p1 }
  0x25   : > { %1571 = shalt.err (!%p1568_p6)
}
  0x26   : > { %s1704_s11 = smov 128   ;;  %s1705_s12 = smov 8  }
  0x27   : > { %1377 = dma.hbm_to_vmem [thread:$0]  (!%p1793_p11), %s2034_s1, 6144, %s1786_s25, [#allocation7], %s1704_s11, %s1704_s11, %s1705_s12  }
  0x28   : > { %s1572_s27 = scalar_lea.hbm %s2035_s2, 4096 }
  0x29   : > { %p1573_p2 = scmp.ne.s32.totalorder %s2035_s2, %s1572_s27  ;;  %p1579_p10 = scmp.lt.u32.totalorder %s1572_s27, %s2035_s2 }
  0x2b   : > { %p1575_p1 = pnand %p1573_p2, %p1546_p13 }
  0x2d   : > { %p1576_p6 = pneg %p1575_p1 }
  0x2f   : > { %p1581_p3 = pnand %p1579_p10, %p1576_p6 }
  0x31   : > { %1584 = shalt.err (!%p1581_p3)
}
  0x32   : > { %s1585_s25 = scalar_lea.vmem %s1797_s28, 4096  ;;  %p1593_p12 = scmp.lt.s32.totalorder %s1797_s28, %s1797_s28 }
  0x33   : > { %p1586_p5 = scmp.ne.s32.totalorder %s1797_s28, %s1585_s25  ;;  %p1594_p0 = scmp.lt.s32.totalorder %s1585_s25, %s1585_s25 }
  0x35   : > { %p1588_p7 = pnand %p1586_p5, %p1546_p13  ;;  %p1595_p2 = por %p1594_p0, %p1593_p12 }
  0x37   : > { %p1589_p9 = pneg %p1588_p7 }
  0x39   : > { %p1596_p1 = pnand %p1595_p2, %p1589_p9 }
  0x3b   : > { %1599 = shalt.err (!%p1596_p1)
}
  0x3c   : > { %s1706_s7 = smov 64   ;;  %s1707_s8 = smov 4  }
  0x3d   : > { %1380 = dma.hbm_to_vmem [thread:$0]  (!%p1793_p11), %s2035_s2, 4096, %s1797_s28, [#allocation7], %s1706_s7, %s1706_s7, %s1707_s8  }
  0x3e   : > { %s1852_s11 = sadd.s32 1, %s1700_s18   ;;  %s28_s13 = sadd.s32 1, %s1696_s17 }
  0x3f   : > { %s25_s12 = ssub.s32 %s1700_s18, %s1852_s11  ;;  %p35_p6 = scmp.ne.s32.totalorder %s1696_s17, %s1692_s16 }
  0x40   : > { %p26_p13 = scmp.eq.s32.totalorder %s25_s12, 0  ;;  %p36_p10 = scmp.eq.s32.totalorder %s1700_s18, 0 }
  0x41   : > { %p2045_p5 = scmp.eq.s32.totalorder %s1763_s19, 1  ;;  %p1391_p9 = scmp.lt.s32.totalorder %s1700_s18, 2 }
  0x42   : > { %s1861_s14 = scalar_select %p26_p13, %s1696_s17, %s28_s13  }
  0x43   : > { %p37_p3 = por %p36_p10, %p35_p6  ;;  %p1865_p7 = por %p2045_p5, %p35_p6 }
  0x44   : > { %s183_s26 = sand.u32 1, %s1696_s17   ;;  %s1360_s28 = smul.u32 768, %s1700_s18 }
  0x45   : > { %s2046_s20 = scalar_select %p1865_p7, 1, 0 }
  0x46   : > { %s1359_s24 = smul.u32 48, %s183_s26  ;;  %p1872_p11 = pnand %p1391_p9, %p37_p3 }
  0x47   : > { %s1879_s5 = scalar_lea.hbm %s2033_s0, %s1360_s28  ;;  %s1883_s7 = scalar_lea.sflag [#allocation4], %s183_s26 }
  0x48   : > { %s187_s6 = scalar_lea.vmem [#allocation3], %s1359_s24  ;;  %s1600_s8 = scalar_lea.hbm %s1879_s5, 768 }
  0x49   : > { %s195_s25 = sshll.u32 %s187_s6, 4  ;;  %p1601_p12 = scmp.ne.s32.totalorder %s1879_s5, %s1600_s8  ;;  %s1881_s25 = int_to_ptr.vmem [resolvable:$true] %s195_s25 }
  0x4a   : > { %p1602_p0 = pneg %p1872_p11  ;;  %s1605_s12 = scalar_lea.hbm %s2033_s0, 1536 }
  0x4b   : > { %p1606_p13 = scmp.lt.u32.totalorder %s1879_s5, %s2033_s0  ;;  %p1607_p6 = scmp.lt.u32.totalorder %s1605_s12, %s1600_s8 }
  0x4c   : > { %p1603_p2 = pnand %p1602_p0, %p1601_p12  ;;  %p1609_p3 = scmp.lt.u32.totalorder %s1600_s8, %s1879_s5 }
  0x4d   : > { %p1608_p10 = por %p1607_p6, %p1606_p13 }
  0x4e   : > { %p1604_p1 = pneg %p1603_p2 }
  0x4f   : > { %p1610_p5 = por %p1609_p3, %p1608_p10 }
  0x51   : > { %p1611_p9 = pnand %p1610_p5, %p1604_p1 }
  0x53   : > { %1614 = shalt.err (!%p1611_p9)
}
  0x54   : > { %s1615_s26 = scalar_lea.vmem %s1881_s25, 768  ;;  %s1708_s24 = smov [#allocation3]  }
  0x55   : > { %p1616_p12 = scmp.ne.s32.totalorder %s1881_s25, %s1615_s26  ;;  %s1620_s29 = sshll.u32 %s1708_s24, 4  ;;  %s1621_s29 = int_to_ptr.vmem [resolvable:$false] %s1620_s29 }
  0x56   : > { %s1622_s30 = scalar_lea.vmem %s1621_s29, 1536  ;;  %p1623_p4 = scmp.lt.s32.totalorder %s1881_s25, %s1621_s29 }
  0x57   : > { %p1618_p2 = pnand %p1616_p12, %p1602_p0  ;;  %p1624_p13 = scmp.lt.s32.totalorder %s1622_s30, %s1615_s26 }
  0x59   : > { %p1619_p7 = pneg %p1618_p2  ;;  %p1625_p6 = por %p1624_p13, %p1623_p4 }
  0x5b   : > { %p1626_p10 = pnand %p1625_p6, %p1619_p7 }
  0x5d   : > { %1629 = shalt.err (!%p1626_p10)
}
  0x5e   : > { %s1709_s6 = smov 384   ;;  %s1710_s8 = smov 24  }
  0x5f   : > { %1384 = dma.hbm_to_vmem [thread:$0]  (!%p1872_p11), %s1879_s5, 768, %s1881_s25, %s1883_s7, %s1709_s6, %s1709_s6, %s1710_s8  }
  0x60   : > { %207 = sbr.rel (%p1782_p8) target bundleno = 1100 (0x44c), region = 36  ;;  %s1914_s9 = sand.u32 (!%p1782_p8), 1, %s1692_s16  }
  0x61   : > { %s1361_s10 = smul.u32 (!%p1782_p8), 48, %s1914_s9  ;;  %s210_s12 = scalar_lea.sflag (!%p1782_p8), [#allocation4], %s1914_s9 }
  0x62   : > { %p2048_p4 = scmp.ne.s32.totalorder (!%p1782_p8), %s2041_s21, 0 }
  0x63   : > { %s1918_s13 = scalar_lea.vmem (!%p1782_p8), [#allocation3], %s1361_s10 }
  0x67   : > { %1675 = dma.done.wait (%p2048_p4), %s210_s12, 768  }
  0x68   : > { %1677 = vsyncadd (%p2048_p4), %s210_s12, 4294966528  ;;  %p2049_p7 = scmp.eq.s32.totalorder %s1763_s19, 0 }
  0x6a   : > { %1679 = dma.done.wait (%p2049_p7), [#allocation7], 10240   ;;  %p2050_p8 = pmov %p2049_p7 }
  0x6b   : > { %v1711_v0 = vmov 0   ;;  %v1440_v1 = vld [vmem:[#allocation6 + $0x4] ss:$8 sps:$4 sm:$0xff]   ;;  %v1442_v2 = vld [vmem:[#allocation6] ss:$8 sps:$4 sm:$0xff]   ;;  %vm263_vm0 = vcmask 556032  }
  0x6c   : > { %1681 = vsyncadd (%p2050_p8), [#allocation7], 4294957056  ;;  %251 = vst [vmem:[#allocation2 + $0x10] sm:$0xff] %v1711_v0  ;;  %640 = vmatprep.subr.bf16.mxu0 %v1440_v1  ;;  %v1443_v3 = vld [vmem:[#allocation6 + $0x14] ss:$8 sps:$4 sm:$0xff]   ;;  %v1512_v31 = vld [vmem:[#allocation8 + $0x40] sm:$0xff]  }
  0x6d   : > { %641 = vmatpush1.bf16.msra.mxu0 %v1442_v2  ;;  %v1445_v4 = vld [vmem:[#allocation6 + $0x10] ss:$8 sps:$4 sm:$0xff]   ;;  %v1446_v5 = vld [vmem:[#allocation6 + $0x24] ss:$8 sps:$4 sm:$0xff]   ;;  %v1448_v6 = vld [vmem:[#allocation6 + $0x20] ss:$8 sps:$4 sm:$0xff]   ;;  %1271 = vmatprep.subr.bf16.mxu1 %v1512_v31 }
  0x6e   : > { %642 = vmatprep.subr.bf16.mxu0 %v1443_v3  ;;  %v1449_v7 = vld [vmem:[#allocation6 + $0x34] ss:$8 sps:$4 sm:$0xff]   ;;  %v1451_v8 = vld [vmem:[#allocation6 + $0x30] ss:$8 sps:$4 sm:$0xff]   ;;  %v1452_v9 = vld [vmem:[#allocation6 + $0x44] ss:$8 sps:$4 sm:$0xff]  }
  0x6f   : > { %v1454_v10 = vld [vmem:[#allocation6 + $0x40] ss:$8 sps:$4 sm:$0xff]   ;;  %v1455_v11 = vld [vmem:[#allocation6 + $0x54] ss:$8 sps:$4 sm:$0xff]   ;;  %v1457_v12 = vld [vmem:[#allocation6 + $0x50] ss:$8 sps:$4 sm:$0xff]  }
  0x70   : > { %v1458_v13 = vld [vmem:[#allocation6 + $0x64] ss:$8 sps:$4 sm:$0xff]   ;;  %v1460_v17 = vld [vmem:[#allocation6 + $0x60] ss:$8 sps:$4 sm:$0xff]   ;;  %v1461_v20 = vld [vmem:[#allocation6 + $0x74] ss:$8 sps:$4 sm:$0xff]  }
  0x71   : > { %643 = vmatpush1.bf16.msra.mxu0 %v1445_v4  ;;  %v253_v14 = vld [vmem:[%s1918_s13 + $0x8] sm:$0xff]  ;;  %v256_v15 = vld [vmem:[%s1918_s13 + $0x20] sm:$0xff]  ;;  %v1935_v19 = vld [vmem:[%s1918_s13 + $0x18] sm:$0xff]  ;;  %vm1713_vm1 = vmmov 0   ;;  %s1184_s27 = sshll.u32 %s1914_s9, 4  ;;  %s1270_s7 = sshll.u32 %s1763_s19, 8 }
  0x72   : > { %644 = vmatprep.subr.bf16.mxu0 %v1446_v5  ;;  %v259_v16 = vpack.c.bf16 %v256_v15, %v253_v14  ;;  %v1932_v18 = vld [vmem:[%s1918_s13] sm:$0xff]  ;;  %v254_v27 = vld [vmem:[%s1918_s13 + $0x10] sm:$0xff]  ;;  %v257_v28 = vld [vmem:[%s1918_s13 + $0x28] sm:$0xff]  ;;  %s245_s5 = scalar_lea.vmem [#allocation9], %s1184_s27  ;;  %s1989_s24 = scalar_lea.hbm %s2037_s4, %s1270_s7 }
  0x73   : > { %v258_v21 = vpack.c.bf16 %v1935_v19, %v1932_v18  ;;  %v1463_v22 = vld [vmem:[#allocation6 + $0x70] ss:$8 sps:$4 sm:$0xff]   ;;  %v1464_v23 = vld [vmem:[#allocation6 + $0x84] ss:$8 sps:$4 sm:$0xff]   ;;  %v1466_v24 = vld [vmem:[#allocation6 + $0x80] ss:$8 sps:$4 sm:$0xff]   ;;  %v260_v30 = vpack.c.bf16 %v257_v28, %v254_v27 }
  0x74   : > { %672 = vmatprep.mubr.bf16.mxu0 %v259_v16  ;;  %v1467_v25 = vld [vmem:[#allocation6 + $0x94] ss:$8 sps:$4 sm:$0xff]   ;;  %v1469_v26 = vld [vmem:[#allocation6 + $0x90] ss:$8 sps:$4 sm:$0xff]   ;;  %v1470_v29 = vld [vmem:[#allocation6 + $0xa4] ss:$8 sps:$4 sm:$0xff]  }
  0x75   : > { %645 = vmatpush1.bf16.msra.mxu0 %v1448_v6  ;;  %v1513_v32 = vld [vmem:[#allocation8] sm:$0xff]   ;;  %264 = vst.msk [vmem:[#allocation2 + $0x10] sm:$0xff] %vm263_vm0, %v260_v30  ;;  %v1514_v33 = vld [vmem:[#allocation8 + $0x48] sm:$0xff]   ;;  %v1516_v35 = vld [vmem:[#allocation8 + $0x50] sm:$0xff]   ;;  %s1081_s25 = sshll.u32 %s245_s5, 4  ;;  %s1068_s29 = scalar_lea.sflag [#allocation5], %s1914_s9  ;;  %s1984_s25 = int_to_ptr.vmem [resolvable:$true] %s1081_s25 }
  0x76   : > { %646 = vmatprep.subr.bf16.mxu0 %v1449_v7  ;;  %1272 = vmatpush3.bf16.msra.mxu1 %v1513_v32  ;;  %v1515_v34 = vld [vmem:[#allocation8 + $0x8] sm:$0xff]   ;;  %v1473_v37 = vld [vmem:[#allocation6 + $0xb4] ss:$8 sps:$4 sm:$0xff]   ;;  %v1475_v40 = vld [vmem:[#allocation6 + $0xb0] ss:$8 sps:$4 sm:$0xff]   ;;  %s1630_s19 = scalar_lea.vmem %s1984_s25, 256 }
  0x77   : > { %1273 = vmatprep.subr.bf16.mxu1 %v1514_v33  ;;  %v1472_v36 = vld [vmem:[#allocation6 + $0xa0] ss:$8 sps:$4 sm:$0xff]   ;;  %v1517_v38 = vld [vmem:[#allocation8 + $0x10] sm:$0xff]   ;;  %v1518_v39 = vld [vmem:[#allocation8 + $0x58] sm:$0xff]   ;;  %p1631_p11 = scmp.ne.s32.totalorder %s1984_s25, %s1630_s19  ;;  %p2051_p0 = scmp.ne.s32.totalorder %s2046_s20, 0 }
  0x78   : > { %v1476_v41 = vld [vmem:[#allocation6 + $0xc4] ss:$8 sps:$4 sm:$0xff]   ;;  %v1478_v42 = vld [vmem:[#allocation6 + $0xc0] ss:$8 sps:$4 sm:$0xff]   ;;  %v1519_v43 = vld [vmem:[#allocation8 + $0x18] sm:$0xff]   ;;  %s1714_s30 = smov [#allocation9]  }
  0x79   : > { %647 = vmatpush1.bf16.msra.mxu0 %v1451_v8  ;;  %v1520_v44 = vld [vmem:[#allocation8 + $0x60] sm:$0xff]   ;;  %v1479_v45 = vld [vmem:[#allocation6 + $0xd4] ss:$8 sps:$4 sm:$0xff]   ;;  %v1522_v47 = vld [vmem:[#allocation8 + $0x68] sm:$0xff]   ;;  %p1632_p1 = pnand %p1631_p11, %p2051_p0  ;;  %s1634_s6 = sshll.u32 %s1714_s30, 4  ;;  %s1635_s6 = int_to_ptr.vmem [resolvable:$false] %s1634_s6 }
  0x7a   : > { %648 = vmatprep.subr.bf16.mxu0 %v1452_v9  ;;  %1274 = vmatpush3.bf16.msra.mxu1 %v1515_v34  ;;  %v1521_v46 = vld [vmem:[#allocation8 + $0x20] sm:$0xff]   ;;  %v1481_v48 = vld [vmem:[#allocation6 + $0xd0] ss:$8 sps:$4 sm:$0xff]   ;;  %v1485_v51 = vld [vmem:[#allocation6 + $0xf4] ss:$8 sps:$4 sm:$0xff]   ;;  %s1636_s8 = scalar_lea.vmem %s1635_s6, 512  ;;  %p1637_p5 = scmp.lt.s32.totalorder %s1984_s25, %s1635_s6 }
  0x7b   : > { %1275 = vmatprep.subr.bf16.mxu1 %v1516_v35  ;;  %v1482_v49 = vld [vmem:[#allocation6 + $0xe4] ss:$8 sps:$4 sm:$0xff]   ;;  %v1484_v50 = vld [vmem:[#allocation6 + $0xe0] ss:$8 sps:$4 sm:$0xff]   ;;  %v1487_v52 = vld [vmem:[#allocation6 + $0xf0] ss:$8 sps:$4 sm:$0xff]   ;;  %p1633_p3 = pneg %p1632_p1  ;;  %p1638_p9 = scmp.lt.s32.totalorder %s1636_s8, %s1630_s19 }
  0x7c   : > { %v1490_v53 = vld [vmem:[#allocation6 + $0x104] ss:$8 sps:$4 sm:$0xff]   ;;  %v1488_v54 = vld [vmem:[#allocation6 + $0x100] ss:$8 sps:$4 sm:$0xff]   ;;  %v1493_v55 = vld [vmem:[#allocation6 + $0x114] ss:$8 sps:$4 sm:$0xff]  }
  0x7d   : > { %649 = vmatpush1.bf16.msra.mxu0 %v1454_v10  ;;  %v1491_v56 = vld [vmem:[#allocation6 + $0x110] ss:$8 sps:$4 sm:$0xff]   ;;  %v1496_v57 = vld [vmem:[#allocation6 + $0x124] ss:$8 sps:$4 sm:$0xff]   ;;  %v1494_v58 = vld [vmem:[#allocation6 + $0x120] ss:$8 sps:$4 sm:$0xff]   ;;  %p1639_p12 = por %p1638_p9, %p1637_p5 }
  0x7e   : > { %650 = vmatprep.subr.bf16.mxu0 %v1455_v11  ;;  %1276 = vmatpush3.bf16.msra.mxu1 %v1517_v38  ;;  %v1499_v59 = vld [vmem:[#allocation6 + $0x134] ss:$8 sps:$4 sm:$0xff]   ;;  %v1497_v60 = vld [vmem:[#allocation6 + $0x130] ss:$8 sps:$4 sm:$0xff]   ;;  %v1502_v61 = vld [vmem:[#allocation6 + $0x144] ss:$8 sps:$4 sm:$0xff]  }
  0x7f   : > { %1277 = vmatprep.subr.bf16.mxu1 %v1518_v39  ;;  %v1500_v62 = vld [vmem:[#allocation6 + $0x140] ss:$8 sps:$4 sm:$0xff]   ;;  %v1505_v63 = vld [vmem:[#allocation6 + $0x154] ss:$8 sps:$4 sm:$0xff]   ;;  %v1503_v1 = vld [vmem:[#allocation6 + $0x150] ss:$8 sps:$4 sm:$0xff]   ;;  %p1640_p2 = pnand %p1639_p12, %p1633_p3 }
  0x80   : > { %v1508_v2 = vld [vmem:[#allocation6 + $0x164] ss:$8 sps:$4 sm:$0xff]   ;;  %v1511_v3 = vld [vmem:[#allocation6 + $0x174] ss:$8 sps:$4 sm:$0xff]   ;;  %v1509_v4 = vld [vmem:[#allocation6 + $0x170] ss:$8 sps:$4 sm:$0xff]  }
  0x81   : > { %651 = vmatpush1.bf16.msra.mxu0 %v1457_v12  ;;  %v267_v5 = vld [vmem:[#allocation2 + $0x10] sm:$0xff]  ;;  %v1523_v6 = vld [vmem:[#allocation8 + $0x28] sm:$0xff]   ;;  %v1524_v7 = vld [vmem:[#allocation8 + $0x70] sm:$0xff]   ;;  %v1712_v11 = vmov 0.0   ;;  %v382_v12 = vlaneseq }
  0x82   : > { %652 = vmatprep.subr.bf16.mxu0 %v1458_v13  ;;  %1278 = vmatpush3.bf16.msra.mxu1 %v1519_v43  ;;  %v1525_v8 = vld [vmem:[#allocation8 + $0x30] sm:$0xff]   ;;  %v1526_v9 = vld [vmem:[#allocation8 + $0x78] sm:$0xff]   ;;  %v1952_v15 = vld [vmem:[%s2036_s3] sm:$0xff] }
  0x83   : > { %1279 = vmatprep.subr.bf16.mxu1 %v1520_v44  ;;  %v1527_v10 = vld [vmem:[#allocation8 + $0x38] sm:$0xff]   ;;  %v1946_v13 = vshrl.u32 %v382_v12, 7  ;;  %v1528_v35 = vld [vmem:[#allocation8 + $0x80] sm:$0xff]  }
  0x84   : > { %v1531_v38 = vld [vmem:[#allocation8 + $0x98] sm:$0xff]   ;;  %v1532_v39 = vld [vmem:[#allocation8 + $0xa0] sm:$0xff]  }
  0x85   : > { %653 = vmatpush1.bf16.msra.mxu0 %v1460_v17  ;;  %v384_v14 = vsub.s32 0, %v1946_v13  ;;  %v388_v16 = vsub.s32 4, %v1946_v13  ;;  %v734_v43 = vsub.s32 1, %v1946_v13 }
  0x86   : > { %654 = vmatprep.subr.bf16.mxu0 %v1461_v20  ;;  %1280 = vmatpush3.bf16.msra.mxu1 %v1521_v46 }
  0x87   : > { %1281 = vmatprep.subr.bf16.mxu1 %v1522_v47  ;;  %v385_v17 = vrot.slane %v1952_v15, %v384_v14  ;;  %v389_v18 = vrot.slane %v1952_v15, %v388_v16 }
  0x89   : > { %655 = vmatpush1.bf16.msra.mxu0 %v1463_v22  ;;  %v395_v19 = vrot.slane %v385_v17, %v384_v14  ;;  %v399_v20 = vrot.slane %v389_v18, %v384_v14 }
  0x8a   : > { %656 = vmatprep.subr.bf16.mxu0 %v1464_v23  ;;  %1282 = vmatpush3.bf16.msra.mxu1 %v1523_v6 }
  0x8b   : > { %1283 = vmatprep.subr.bf16.mxu1 %v1524_v7 }
  0x8d   : > { %657 = vmatpush1.bf16.msra.mxu0 %v1466_v24 }
  0x8e   : > { %658 = vmatprep.subr.bf16.mxu0 %v1467_v25  ;;  %1284 = vmatpush3.bf16.msra.mxu1 %v1525_v8 }
  0x8f   : > { %1285 = vmatprep.subr.bf16.mxu1 %v1526_v9 }
  0x91   : > { %659 = vmatpush1.bf16.msra.mxu0 %v1469_v26 }
  0x92   : > { %660 = vmatprep.subr.bf16.mxu0 %v1470_v29  ;;  %1286 = vmatpush3.bf16.msra.mxu1 %v1527_v10 }
  0x93   : > { %1311 = vmatprep.subr.bf16.mxu1 %v1712_v11 }
  0x95   : > { %661 = vmatpush1.bf16.msra.mxu0 %v1472_v36  ;;  %v1529_v36 = vld [vmem:[#allocation8 + $0x88] sm:$0xff]  }
  0x96   : > { %662 = vmatprep.subr.bf16.mxu0 %v1473_v37  ;;  %v1530_v37 = vld [vmem:[#allocation8 + $0x90] sm:$0xff]  }
  0x99   : > { %663 = vmatpush1.bf16.msra.mxu0 %v1475_v40  ;;  %v1533_v40 = vld [vmem:[#allocation8 + $0xa8] sm:$0xff]  }
  0x9a   : > { %664 = vmatprep.subr.bf16.mxu0 %v1476_v41  ;;  %v1534_v41 = vld [vmem:[#allocation8 + $0xb0] sm:$0xff]  }
  0x9d   : > { %665 = vmatpush1.bf16.msra.mxu0 %v1478_v42  ;;  %v1535_v42 = vld [vmem:[#allocation8 + $0xb8] sm:$0xff]  }
  0x9e   : > { %666 = vmatprep.subr.bf16.mxu0 %v1479_v45  ;;  %v735_v45 = vrot.slane %v1952_v15, %v734_v43 }
  0xa1   : > { %667 = vmatpush1.bf16.msra.mxu0 %v1481_v48 }
  0xa2   : > { %668 = vmatprep.subr.bf16.mxu0 %v1482_v49 }
  0xa5   : > { %669 = vmatpush1.bf16.msra.mxu0 %v1484_v50 }
  0xa6   : > { %670 = vmatprep.subr.bf16.mxu0 %v1485_v51 }
  0xa9   : > { %671 = vmatpush1.bf16.msra.mxu0 %v1487_v52 }
  0xaa   : > { %683 = vmatprep.subr.bf16.mxu0 %v1490_v53 }
  0xac   : > { %673 = vmatmul.mubr.bf16.vlgmr.msra.gmra.mrb[0].mxu0 %v258_v21 }
  0xad   : > { %684 = vmatpush1.bf16.msra.mxu0 %v1488_v54  ;;  %715 = vmatprep.mubr.bf16.mxu0 %v1711_v0  ;;  %v1506_v0 = vld [vmem:[#allocation6 + $0x160] ss:$8 sps:$4 sm:$0xff]  }
  0xae   : > { %685 = vmatprep.subr.bf16.mxu0 %v1493_v55  ;;  %v1536_v55 = vld [vmem:[#allocation8 + $0xc0] sm:$0xff]  }
  0xb1   : > { %686 = vmatpush1.bf16.msra.mxu0 %v1491_v56 }
  0xb2   : > { %687 = vmatprep.subr.bf16.mxu0 %v1496_v57  ;;  %v1537_v57 = vld [vmem:[#allocation8 + $0xc8] sm:$0xff]  }
  0xb5   : > { %688 = vmatpush1.bf16.msra.mxu0 %v1494_v58  ;;  %v1538_v58 = vld [vmem:[#allocation8 + $0xd0] sm:$0xff]  }
  0xb6   : > { %689 = vmatprep.subr.bf16.mxu0 %v1499_v59  ;;  %v1539_v59 = vld [vmem:[#allocation8 + $0xd8] sm:$0xff]  }
  0xb9   : > { %690 = vmatpush1.bf16.msra.mxu0 %v1497_v60  ;;  %v1540_v60 = vld [vmem:[#allocation8 + $0xe0] sm:$0xff]  }
  0xba   : > { %691 = vmatprep.subr.bf16.mxu0 %v1502_v61  ;;  %v1541_v61 = vld [vmem:[#allocation8 + $0xe8] sm:$0xff]  }
  0xbd   : > { %692 = vmatpush1.bf16.msra.mxu0 %v1500_v62  ;;  %v1542_v62 = vld [vmem:[#allocation8 + $0xf0] sm:$0xff]  }
  0xbe   : > { %693 = vmatprep.subr.bf16.mxu0 %v1505_v63  ;;  %v1543_v63 = vld [vmem:[#allocation8 + $0xf8] sm:$0xff]  }
  0xc1   : > { %694 = vmatpush1.bf16.msra.mxu0 %v1503_v1  ;;  %v878_v1 = vsub.s32 2, %v1946_v13 }
  0xc2   : > { %695 = vmatprep.subr.bf16.mxu0 %v1508_v2 }
  0xc3   : > { %v879_v2 = vrot.slane %v1952_v15, %v878_v1 }
  0xc5   : > { %696 = vmatpush1.bf16.msra.mxu0 %v1506_v0 }
  0xc6   : > { %697 = vmatprep.subr.bf16.mxu0 %v1511_v3 }
  0xc9   : > { %698 = vmatpush1.bf16.msra.mxu0 %v1509_v4 }
  0xcc   : > { %716 = vmatmul.mubr.bf16.vlgmr.msra.gmra.mrb[0].mxu0 %v267_v5 }
 0x19f   : > { %v717_v21 = vpop.f32.mrb[0].mxu0 }
 0x1a0   : > { %v1351_v22 = vadd.f32 %v717_v21, %v395_v19  ;;  %v719_v23 = vpop.f32.mrb[1].mxu0 }
 0x1a1   : > { %v1352_v24 = vadd.f32 %v719_v23, %v399_v20  ;;  %v721_v25 = vpop.f32.mrb[2].mxu0 }
 0x1a2   : > { %v1353_v26 = vadd.f32 %v721_v25, %v395_v19  ;;  %v723_v27 = vpop.f32.mrb[3].mxu0  ;;  %v726_v29 = vmax.f32 %v1351_v22, 0.0 }
 0x1a3   : > { %v1354_v28 = vadd.f32 %v723_v27, %v399_v20  ;;  %v727_v31 = vmax.f32 %v1352_v24, 0.0 }
 0x1a4   : > { %v728_v30 = vmax.f32 %v1353_v26, 0.0 }
 0x1a5   : > { %v729_v32 = vmax.f32 %v1354_v28, 0.0 }
 0x1a6   : > { %v730_v33 = vpack.c.bf16 %v728_v30, %v726_v29 }
 0x1a7   : > { %v731_v34 = vpack.c.bf16 %v729_v32, %v727_v31 }
 0x1a9   : > { %864 = vmatprep.mubr.bf16.mxu1 %v731_v34 }
 0x1aa   : > { %865 = vmatmul.mubr.bf16.vlgmr.msra.gmra.mrb[0].mxu1 %v730_v33 }
 0x1ab   : > { %1312 = vmatpush3.bf16.msra.mxu1 %v1528_v35  ;;  %1327 = vmatprep.mubr.msk.bf16.mxu1 %vm1713_vm1, %v1712_v11 }
 0x1ac   : > { %1313 = vmatprep.subr.bf16.mxu1 %v1712_v11 }
 0x1af   : > { %1314 = vmatpush3.bf16.msra.mxu1 %v1529_v36 }
 0x1b0   : > { %1315 = vmatprep.subr.bf16.mxu1 %v1712_v11 }
 0x1b3   : > { %1316 = vmatpush3.bf16.msra.mxu1 %v1530_v37 }
 0x1b4   : > { %1317 = vmatprep.subr.bf16.mxu1 %v1712_v11 }
 0x1b7   : > { %1318 = vmatpush3.bf16.msra.mxu1 %v1531_v38 }
 0x1b8   : > { %1319 = vmatprep.subr.bf16.mxu1 %v1712_v11 }
 0x1bb   : > { %1320 = vmatpush3.bf16.msra.mxu1 %v1532_v39 }
 0x1bc   : > { %1321 = vmatprep.subr.bf16.mxu1 %v1712_v11 }
 0x1bf   : > { %1322 = vmatpush3.bf16.msra.mxu1 %v1533_v40 }
 0x1c0   : > { %1323 = vmatprep.subr.bf16.mxu1 %v1712_v11 }
 0x1c3   : > { %1324 = vmatpush3.bf16.msra.mxu1 %v1534_v41 }
 0x1c4   : > { %1325 = vmatprep.subr.bf16.mxu1 %v1712_v11 }
 0x1c7   : > { %1326 = vmatpush3.bf16.msra.mxu1 %v1535_v42 }
 0x1c8   : > { %1331 = vmatprep.subr.bf16.mxu1 %v1712_v11 }
 0x27d   : > { %v1287_v44 = vpop.f32.mrb[0].mxu1 }
 0x27e   : > { %v1288_v46 = vpop.f32.mrb[1].mxu1 }
 0x27f   : > { %v1289_v47 = vadd.f32 %v1288_v46, %v1287_v44  ;;  %v1290_v48 = vpop.f32.mrb[2].mxu1 }
 0x280   : > { %v1291_v49 = vpop.f32.mrb[3].mxu1 }
 0x281   : > { %v867_v50 = vadd.f32 %v1289_v47, %v735_v45  ;;  %v1292_v51 = vadd.f32 %v1291_v49, %v1290_v48 }
 0x283   : > { %v870_v52 = vadd.f32 %v1292_v51, %v735_v45  ;;  %v873_v53 = vmax.f32 %v867_v50, 0.0 }
 0x285   : > { %v874_v54 = vmax.f32 %v870_v52, 0.0 }
 0x287   : > { %v875_v56 = vpack.c.bf16 %v874_v54, %v873_v53 }
 0x289   : > { %1328 = vmatmul.mubr.bf16.vlgmr.msra.gmra.mrb[4].mxu1 %v875_v56 }
 0x28a   : > { %1332 = vmatpush3.bf16.msra.mxu1 %v1536_v55  ;;  %1347 = vmatprep.mubr.msk.bf16.mxu1 %vm1713_vm1, %v1712_v11 }
 0x28b   : > { %1333 = vmatprep.subr.bf16.mxu1 %v1712_v11 }
 0x28e   : > { %1334 = vmatpush3.bf16.msra.mxu1 %v1537_v57 }
 0x28f   : > { %1335 = vmatprep.subr.bf16.mxu1 %v1712_v11 }
 0x292   : > { %1336 = vmatpush3.bf16.msra.mxu1 %v1538_v58 }
 0x293   : > { %1337 = vmatprep.subr.bf16.mxu1 %v1712_v11 }
 0x296   : > { %1338 = vmatpush3.bf16.msra.mxu1 %v1539_v59 }
 0x297   : > { %1339 = vmatprep.subr.bf16.mxu1 %v1712_v11 }
 0x29a   : > { %1340 = vmatpush3.bf16.msra.mxu1 %v1540_v60 }
 0x29b   : > { %1341 = vmatprep.subr.bf16.mxu1 %v1712_v11 }
 0x29e   : > { %1342 = vmatpush3.bf16.msra.mxu1 %v1541_v61 }
 0x29f   : > { %1343 = vmatprep.subr.bf16.mxu1 %v1712_v11 }
 0x2a2   : > { %1344 = vmatpush3.bf16.msra.mxu1 %v1542_v62 }
 0x2a3   : > { %1345 = vmatprep.subr.bf16.mxu1 %v1712_v11  ;;  %v974_v11 = vsub.s32 3, %v1946_v13 }
 0x2a5   : > { %v975_v12 = vrot.slane %v1952_v15, %v974_v11 }
 0x2a6   : > { %1346 = vmatpush3.bf16.msra.mxu1 %v1543_v63 }
 0x35c   : > { %v962_v0 = vpop.f32.mrb[4].mxu1 }
 0x35d   : > { %v963_v3 = vadd.f32 %v962_v0, %v879_v2  ;;  %v1329_v4 = vpop.f32.mrb[5].mxu1 }
 0x35e   : > { %v965_v5 = vpop.f32.mrb[6].mxu1 }
 0x35f   : > { %v966_v6 = vadd.f32 %v965_v5, %v879_v2  ;;  %v1330_v7 = vpop.f32.mrb[7].mxu1  ;;  %v969_v8 = vmax.f32 %v963_v3, 0.0 }
 0x361   : > { %v970_v9 = vmax.f32 %v966_v6, 0.0 }
 0x363   : > { %v971_v10 = vpack.c.bf16 %v970_v9, %v969_v8 }
 0x365   : > { %1348 = vmatmul.mubr.bf16.vlgmr.msra.gmra.mrb[8].mxu1 %v971_v10 }
 0x438   : > { %v1058_v14 = vpop.f32.mrb[8].mxu1 }
 0x439   : > { %v1059_v16 = vadd.f32 %v1058_v14, %v975_v12  ;;  %v1349_v17 = vpop.f32.mrb[9].mxu1 }
 0x43a   : > { %v1061_v18 = vpop.f32.mrb[10].mxu1 }
 0x43b   : > { %1065 = vst [vmem:[%s245_s5] sm:$0xff] %v1059_v16  ;;  %v1062_v13 = vadd.f32 %v1061_v18, %v975_v12  ;;  %v1350_v15 = vpop.f32.mrb[11].mxu1 }
 0x43d   : > { %1066 = vst [vmem:[%s245_s5 + $0x8] sm:$0xff] %v1062_v13 }
 0x43e   : > { %1643 = shalt.err (!%p1640_p2)
}
 0x43f   : > { %s1644_s10 = scalar_lea.hbm %s1989_s24, 256  ;;  %s1648_s21 = scalar_lea.hbm %s2037_s4, 512 }
 0x440   : > { %p1645_p13 = scmp.ne.s32.totalorder %s1989_s24, %s1644_s10  ;;  %p1649_p4 = scmp.lt.u32.totalorder %s1989_s24, %s2037_s4 }
 0x441   : > { %p1650_p7 = scmp.lt.u32.totalorder %s1648_s21, %s1644_s10  ;;  %p1652_p11 = scmp.lt.u32.totalorder %s1644_s10, %s1989_s24 }
 0x442   : > { %p1646_p6 = pnand %p1645_p13, %p2051_p0 }
 0x443   : > { %p1651_p8 = por %p1650_p7, %p1649_p4 }
 0x444   : > { %p1647_p10 = pneg %p1646_p6 }
 0x445   : > { %p1653_p1 = por %p1652_p11, %p1651_p8 }
 0x447   : > { %p1654_p3 = pnand %p1653_p1, %p1647_p10 }
 0x449   : > { %1657 = shalt.err (!%p1654_p3)
}
 0x44a   : > { %s1715_s5 = smov 128   ;;  %s1716_s7 = smov 8  }
 0x44b   : > { %1372 = dma.vmem_to_hbm [thread:$0]  (%p2051_p0), %s1984_s25, 256, %s1989_s24, %s1068_s29, %s1715_s5, %s1715_s5, %s1716_s7  }
 0x44c PF: > { %s1096_s28 = sand.u32 1, %s1688_s15   ;;  %p2052_p5 = scmp.ne.s32.totalorder %s2042_s22, 0 }
 0x44d   : > { %p2053_p9 = scmp.ge.s32.totalorder %s1700_s18, 2  ;;  %s1097_s26 = scalar_lea.sflag [#allocation5], %s1096_s28 }
 0x44f   : > { %p1386_p12 = pnand %p2053_p9, %p2052_p5 }
 0x451   : > { %1683 = dma.done.wait (!%p1386_p12), %s1097_s26, 256  }
 0x452   : > { %1685 = vsyncadd (!%p1386_p12), %s1097_s26, 4294967040  ;;  %p18_p2 = scmp.ge.s32.totalorder %s1852_s11, 4   ;;  %s2054_s15 = smov %s1692_s16 }
 0x453   : > { %s2055_s16 = smov %s1696_s17  ;;  %s2056_s17 = smov %s1861_s14 }
 0x454   : > { %s2057_s18 = smov %s1852_s11  ;;  %20 = sbr.rel (!%p18_p2) target bundleno = 6 (0x6), region = 89 }
 0x45b   :  { %1102 = vsyncpa [#allocation4], 1 }
 0x45c   :  { %1104 = vsyncpa [#allocation4 + $0x1], 1 }
 0x45d   :  { %1105 = vsyncpa [#allocation7], 1 }
 0x45e   :  { %1106 = vsyncpa [#allocation5], 1 }
 0x45f   :  { %1108 = vsyncpa [#allocation5 + $0x1], 1 }

</bundles_post_ra>
